<compile_context>
chip_gen: v7x
topology: tpu7x:2x2x1
jax: 0.10.0
libtpu: 0.0.40
codegen_flags: <defaults>
</compile_context>

<pallas_src>
import jax
import jax.numpy as jnp
from jax.experimental import pallas as pl
from jax.experimental.pallas import tpu as pltpu

D_IN = 28 * 28        # 784
H = 128
NUM_CLASSES = 10
N_PAD = 128           # logits padded to a full lane width (lane-dense stores)
TB_MAX = 2048         # batch tile cap (~19 MB VMEM double-buffered at f32)
VMEM_LIMIT_BYTES = 40 * 1024 * 1024   # > v5e's 16 MiB scoped default, < v7x 64 MiB phys


def _round_up(n, m):
    return ((n + m - 1) // m) * m


def mlp_kernel(x_ref, w1_ref, b1_ref, w2_ref, b2_ref, h_ref, y_ref):
    # x_ref:  (TB, 784) f32       w1_ref: (784, 128) f32    b1_ref: (1, 128) f32
    # w2_ref: (128, 128) f32 (zero-padded cols 10..127)      b2_ref: (1, 128) f32
    # h_ref:  (TB, 128) f32       y_ref:  (TB, 128) f32 (padded, sliced outside)

    # linear1 (f32 MXU, f32 accumulation) + bias + leaky_relu (VPU)
    h = jnp.dot(x_ref[...], w1_ref[...], preferred_element_type=jnp.float32)
    h = h + b1_ref[...]
    h = jnp.maximum(h, 0.01 * h)          # leaky_relu, PyTorch default slope 0.01
    h_ref[...] = h

    # linear2 (f32 MXU) + bias -> lane-dense 128-wide store
    y = jnp.dot(h, w2_ref[...], preferred_element_type=jnp.float32)
    y_ref[...] = y + b2_ref[...]


def prepare_params(w1, b1, w2, b2):
    """One-time weight prep (hoisted out of the per-call path).

    Accepts PyTorch-layout parameters:
      w1: (H, D_IN), b1: (H,), w2: (NUM_CLASSES, H), b2: (NUM_CLASSES,)
    Returns kernel-layout parameters:
      w1_t: (D_IN, H), b1_r: (1, H), w2_p: (H, 128) zero-padded, b2_p: (1, 128).
    """
    w1_t = jnp.asarray(w1, jnp.float32).T
    b1_r = jnp.asarray(b1, jnp.float32).reshape(1, H)
    w2_t = jnp.asarray(w2, jnp.float32).T
    w2_p = jnp.pad(w2_t, ((0, 0), (0, N_PAD - NUM_CLASSES)))
    b2_p = jnp.pad(jnp.asarray(b2, jnp.float32).reshape(1, NUM_CLASSES),
                   ((0, 0), (0, N_PAD - NUM_CLASSES)))
    return w1_t, b1_r, w2_p, b2_p


def _pick_batch_tile(b_pad):
    """Batch tile: multiple of 8, <= TB_MAX, and >=2 grid steps whenever possible
    so the 'parallel' grid axis can shard across both v7x TensorCores."""
    if b_pad <= 2 * TB_MAX:
        tb = max(8, _round_up(-(-b_pad // 2), 8))   # aim for exactly 2 tiles
    else:
        tb = TB_MAX
    return min(tb, max(8, b_pad))


def mlp_forward(x_nchw, params):
    """x_nchw: [B, 1, 28, 28] f32; params from prepare_params.
    Returns (hidden [B, 128], logits [B, 10]) — matching PyTorch forward's (x, y)."""
    w1_t, b1_r, w2_p, b2_p = params

    B = x_nchw.shape[0]
    x2d = x_nchw.reshape(B, D_IN)                 # same as x.view(-1, 28*28); stays f32

    # Pad batch only to a multiple of 8 (sublane granularity), never to TB.
    B_pad = _round_up(max(B, 1), 8)
    if B_pad != B:
        x2d = jnp.pad(x2d, ((0, B_pad - B), (0, 0)))

    TB = _pick_batch_tile(B_pad)
    grid = (pl.cdiv(B_pad, TB),)                  # ragged last block handled by Pallas

    cost = pl.CostEstimate(
        flops=2 * B_pad * D_IN * H + 2 * B_pad * H * N_PAD,
        transcendentals=0,
        bytes_accessed=(B_pad * D_IN * 4 + w1_t.size * 4 + b1_r.size * 4
                        + w2_p.size * 4 + b2_p.size * 4
                        + B_pad * H * 4 + B_pad * N_PAD * 4),
    )

    hidden, logits_p = pl.pallas_call(
        mlp_kernel,
        out_shape=(
            jax.ShapeDtypeStruct((B_pad, H), jnp.float32),
            jax.ShapeDtypeStruct((B_pad, N_PAD), jnp.float32),
        ),
        grid=grid,
        in_specs=[
            pl.BlockSpec((TB, D_IN), lambda i: (i, 0)),   # x: tiled over batch, f32
            pl.BlockSpec((D_IN, H), lambda i: (0, 0)),    # w1: resident
            pl.BlockSpec((1, H), lambda i: (0, 0)),       # b1: resident
            pl.BlockSpec((H, N_PAD), lambda i: (0, 0)),   # w2 (padded): resident
            pl.BlockSpec((1, N_PAD), lambda i: (0, 0)),   # b2 (padded): resident
        ],
        out_specs=[
            pl.BlockSpec((TB, H), lambda i: (i, 0)),
            pl.BlockSpec((TB, N_PAD), lambda i: (i, 0)),
        ],
        compiler_params=pltpu.CompilerParams(
            dimension_semantics=("parallel",),            # megacore-shard the batch
            vmem_limit_bytes=VMEM_LIMIT_BYTES,
        ),
        cost_estimate=cost,
    )(x2d, w1_t, b1_r, w2_p, b2_p)

    # Strip batch padding and the padded logit lanes.
    return hidden[:B], logits_p[:B, :NUM_CLASSES]


def init_params(key):
    """Deterministic synthetic parameters in PyTorch nn.Linear layout/init."""
    k1, k2, k3, k4 = jax.random.split(key, 4)
    bound1 = 1.0 / jnp.sqrt(D_IN)
    bound2 = 1.0 / jnp.sqrt(H)
    w1 = jax.random.uniform(k1, (H, D_IN), jnp.float32, -bound1, bound1)
    b1 = jax.random.uniform(k2, (H,), jnp.float32, -bound1, bound1)
    w2 = jax.random.uniform(k3, (NUM_CLASSES, H), jnp.float32, -bound2, bound2)
    b2 = jax.random.uniform(k4, (NUM_CLASSES,), jnp.float32, -bound2, bound2)
    return w1, b1, w2, b2


if __name__ == "__main__":
    key = jax.random.PRNGKey(0)
    kx, kp = jax.random.split(key)

    B = 8
    x = jax.random.normal(kx, (B, 1, 28, 28), jnp.float32)
    w1, b1, w2, b2 = init_params(kp)

    # One-time prep, hoisted out of the per-call path (perf review).
    params = prepare_params(w1, b1, w2, b2)

    fwd = jax.jit(mlp_forward)
    hidden, logits = fwd(x, params)
    jax.block_until_ready((hidden, logits))

    # Pure-JAX f32 reference, mirroring the PyTorch module.
    x2d = x.reshape(B, D_IN)
    h_ref = x2d @ w1.T + b1
    h_ref = jnp.where(h_ref > 0, h_ref, 0.01 * h_ref)
    y_ref = h_ref @ w2.T + b2

    assert hidden.shape == (B, H) and logits.shape == (B, NUM_CLASSES)
    assert jnp.allclose(hidden, h_ref, atol=2e-2, rtol=2e-2)
    assert jnp.allclose(logits, y_ref, atol=2e-2, rtol=2e-2)

    print("KERNEL_OK")
</pallas_src>

<mosaic_0001>
module attributes {stable_mosaic.version = 11 : i64} {
  func.func @mlp_kernel(%arg0: i32, %arg1: memref<8x784xf32, #tpu.memory_space<vmem>>, %arg2: memref<784x128xf32, #tpu.memory_space<vmem>>, %arg3: memref<1x128xf32, #tpu.memory_space<vmem>>, %arg4: memref<128x128xf32, #tpu.memory_space<vmem>>, %arg5: memref<1x128xf32, #tpu.memory_space<vmem>>, %arg6: memref<8x128xf32, #tpu.memory_space<vmem>>, %arg7: memref<8x128xf32, #tpu.memory_space<vmem>>) attributes {dimension_semantics = [#tpu.dimension_semantics<parallel>], iteration_bounds = array<i64: 1>, scalar_prefetch = 0 : i64, scratch_operands = 0 : i64, tpu.core_type = #tpu.core_type<tc>, window_params = [{transform_indices = @transform_0, window_bounds = array<i64: 8, 784>}, {pipeline_mode = #tpu.pipeline_mode<synchronous>, transform_indices = @transform_1, window_bounds = array<i64: 784, 128>}, {pipeline_mode = #tpu.pipeline_mode<synchronous>, transform_indices = @transform_2, window_bounds = array<i64: 1, 128>}, {pipeline_mode = #tpu.pipeline_mode<synchronous>, transform_indices = @transform_3, window_bounds = array<i64: 128, 128>}, {pipeline_mode = #tpu.pipeline_mode<synchronous>, transform_indices = @transform_4, window_bounds = array<i64: 1, 128>}, {transform_indices = @transform_5, window_bounds = array<i64: 8, 128>}, {transform_indices = @transform_6, window_bounds = array<i64: 8, 128>}]} {
    %c0 = arith.constant 0 : index
    %c0_0 = arith.constant 0 : index
    %0 = vector.load %arg1[%c0, %c0_0] : memref<8x784xf32, #tpu.memory_space<vmem>>, vector<8x784xf32>
    %c0_1 = arith.constant 0 : index
    %c0_2 = arith.constant 0 : index
    %1 = vector.load %arg2[%c0_1, %c0_2] : memref<784x128xf32, #tpu.memory_space<vmem>>, vector<784x128xf32>
    %cst = arith.constant dense<0.000000e+00> : vector<8x128xf32>
    %2 = tpu.matmul %0, %1, %cst {dimension_numbers = #tpu.dot_dimension_numbers<[1], [0], [0], [1], [0, 0, 1, 1], [], []>} : vector<8x784xf32>, vector<784x128xf32>, vector<8x128xf32> -> vector<8x128xf32>
    %c0_3 = arith.constant 0 : index
    %c0_4 = arith.constant 0 : index
    %3 = vector.load %arg3[%c0_3, %c0_4] : memref<1x128xf32, #tpu.memory_space<vmem>>, vector<1x128xf32>
    %4 = vector.broadcast %3 : vector<1x128xf32> to vector<8x128xf32>
    %5 = arith.addf %2, %4 : vector<8x128xf32>
    %cst_5 = arith.constant 0.00999999977 : f32
    %6 = vector.broadcast %cst_5 : f32 to vector<8x128xf32>
    %7 = arith.mulf %6, %5 : vector<8x128xf32>
    %8 = arith.maximumf %5, %7 : vector<8x128xf32>
    %c0_6 = arith.constant 0 : index
    %c0_7 = arith.constant 0 : index
    %9 = vector.load %arg6[%c0_6, %c0_7] : memref<8x128xf32, #tpu.memory_space<vmem>>, vector<8x128xf32>
    tpu.vector_store %arg6[%c0_6, %c0_7], %8 {strides = array<i32>} : memref<8x128xf32, #tpu.memory_space<vmem>>, vector<8x128xf32>,
    %c0_8 = arith.constant 0 : index
    %c0_9 = arith.constant 0 : index
    %10 = vector.load %arg4[%c0_8, %c0_9] : memref<128x128xf32, #tpu.memory_space<vmem>>, vector<128x128xf32>
    %cst_10 = arith.constant dense<0.000000e+00> : vector<8x128xf32>
    %11 = tpu.matmul %8, %10, %cst_10 {dimension_numbers = #tpu.dot_dimension_numbers<[1], [0], [0], [1], [0, 0, 1, 1], [], []>} : vector<8x128xf32>, vector<128x128xf32>, vector<8x128xf32> -> vector<8x128xf32>
    %c0_11 = arith.constant 0 : index
    %c0_12 = arith.constant 0 : index
    %12 = vector.load %arg5[%c0_11, %c0_12] : memref<1x128xf32, #tpu.memory_space<vmem>>, vector<1x128xf32>
    %13 = vector.broadcast %12 : vector<1x128xf32> to vector<8x128xf32>
    %14 = arith.addf %11, %13 : vector<8x128xf32>
    %c0_13 = arith.constant 0 : index
    %c0_14 = arith.constant 0 : index
    %15 = vector.load %arg7[%c0_13, %c0_14] : memref<8x128xf32, #tpu.memory_space<vmem>>, vector<8x128xf32>
    tpu.vector_store %arg7[%c0_13, %c0_14], %14 {strides = array<i32>} : memref<8x128xf32, #tpu.memory_space<vmem>>, vector<8x128xf32>,
    return
  }
  func.func @transform_0(%arg0: i32) -> (i32, i32) {
    %c0_i32 = arith.constant 0 : i32
    %c0_i32_0 = arith.constant 0 : i32
    return %arg0, %c0_i32 : i32, i32
  }
  func.func @transform_1(%arg0: i32) -> (i32, i32) {
    %c0_i32 = arith.constant 0 : i32
    %c0_i32_0 = arith.constant 0 : i32
    %c0_i32_1 = arith.constant 0 : i32
    return %c0_i32, %c0_i32_0 : i32, i32
  }
  func.func @transform_2(%arg0: i32) -> (i32, i32) {
    %c0_i32 = arith.constant 0 : i32
    %c0_i32_0 = arith.constant 0 : i32
    %c0_i32_1 = arith.constant 0 : i32
    return %c0_i32, %c0_i32_0 : i32, i32
  }
  func.func @transform_3(%arg0: i32) -> (i32, i32) {
    %c0_i32 = arith.constant 0 : i32
    %c0_i32_0 = arith.constant 0 : i32
    %c0_i32_1 = arith.constant 0 : i32
    return %c0_i32, %c0_i32_0 : i32, i32
  }
  func.func @transform_4(%arg0: i32) -> (i32, i32) {
    %c0_i32 = arith.constant 0 : i32
    %c0_i32_0 = arith.constant 0 : i32
    %c0_i32_1 = arith.constant 0 : i32
    return %c0_i32, %c0_i32_0 : i32, i32
  }
  func.func @transform_5(%arg0: i32) -> (i32, i32) {
    %c0_i32 = arith.constant 0 : i32
    %c0_i32_0 = arith.constant 0 : i32
    return %arg0, %c0_i32 : i32, i32
  }
  func.func @transform_6(%arg0: i32) -> (i32, i32) {
    %c0_i32 = arith.constant 0 : i32
    %c0_i32_0 = arith.constant 0 : i32
    return %arg0, %c0_i32 : i32, i32
  }
}

</mosaic_0001>

<bundles_post_ra>
// kernel: mlp_forward.1
= control target key start
LH: loop header
LB: loop body
LE: loop exit
PB: predicated region body
PF: predicated region fallthrough
CT: control target
= control target key end

     0   :  { %12 = vsyncpa [#allocation3], 0  ;;  %s1342_s0 = inlined_call_operand.vmem [shape: f32[8,784], index: 0, kind: input, shape index: {}]   ;;  %s1343_s1 = inlined_call_operand.vmem [shape: f32[784,128], index: 1, kind: input, shape index: {}]   ;;  %s1344_s2 = inlined_call_operand.vmem [shape: f32[1,128], index: 2, kind: input, shape index: {}]   ;;  %s1345_s3 = inlined_call_operand.hbm [shape: f32[128,128], index: 3, kind: input, shape index: {}]   ;;  %s1346_s4 = inlined_call_operand.vmem [shape: f32[1,128], index: 4, kind: input, shape index: {}]   ;;  %s1347_s5 = inlined_call_operand.hbm [shape: f32[8,128], index: 5, kind: output, shape index: {0}]   ;;  %s1348_s6 = inlined_call_operand.hbm [shape: f32[8,128], index: 6, kind: output, shape index: {1}]  }
   0x1   :  { %13 = vsyncpa [#allocation4], 0 }
   0x2   :  { %14 = vsyncpa [#allocation7], 0  ;;  %s933_s21 = smov [#allocation2]   ;;  %s861_s25 = scalar_lea.hbm %s1345_s3, 2048 }
   0x3   :  { %s26_s22 = sshll.u32 %s933_s21, 4  ;;  %p862_p0 = scmp.ne.s32.totalorder %s1345_s3, %s861_s25  ;;  %s27_s22 = int_to_ptr.vmem [resolvable:$true] %s26_s22 }
   0x4   :  { %p865_p1 = scmp.lt.u32.totalorder %s861_s25, %s1345_s3 }
   0x6   :  { %p867_p2 = pnand %p865_p1, %p862_p0 }
   0x8   :  { %870 = shalt.err (!%p867_p2)
}
   0x9   :  { %s871_s30 = scalar_lea.vmem %s27_s22, 2048  ;;  %p876_p4 = scmp.lt.s32.totalorder %s27_s22, %s27_s22 }
   0xa   :  { %p872_p3 = scmp.ne.s32.totalorder %s27_s22, %s871_s30  ;;  %p877_p5 = scmp.lt.s32.totalorder %s871_s30, %s871_s30 }
   0xc   :  { %p878_p6 = por %p877_p5, %p876_p4 }
   0xe   :  { %p879_p7 = pnand %p878_p6, %p872_p3 }
  0x10   :  { %882 = shalt.err (!%p879_p7)
}
  0x11   :  { %s934_s7 = smov 128   ;;  %s935_s8 = smov 8  }
  0x12   :  { %32 = dma.hbm_to_vmem [thread:$0]  %s1345_s3, 2048, %s27_s22, [#allocation3], %s934_s7, %s934_s7, %s935_s8  }
  0x13   :  { %927 = dma.done.wait [#allocation3], 2048  }
  0x14   :  { %928 = vsyncadd [#allocation3], 4294965248  ;;  %v61_v0 = vld [vmem:[%s1343_s1 + $0x80] sm:$0xff]  ;;  %v62_v1 = vld [vmem:[%s1343_s1 + $0x88] sm:$0xff]  ;;  %vm937_vm0 = vmmov 0   ;;  %vm150_vm1 = vcmask 130048  }
  0x15   :  { %v45_v2 = vld [vmem:[%s1343_s1] sm:$0xff]  ;;  %v730_v3 = vpack.c.bf16 %v62_v1, %v61_v0  ;;  %v46_v4 = vld [vmem:[%s1343_s1 + $0x8] sm:$0xff]  ;;  %v63_v11 = vld [vmem:[%s1343_s1 + $0x90] sm:$0xff]  ;;  %s939_s20 = smov [#allocation5]  }
  0x16   :  { %v93_v5 = vld [vmem:[%s1343_s1 + $0x180] sm:$0xff]  ;;  %v94_v6 = vld [vmem:[%s1343_s1 + $0x188] sm:$0xff]  ;;  %v732_v7 = vpack.c.bf16 %v46_v4, %v45_v2  ;;  %v64_v13 = vld [vmem:[%s1343_s1 + $0x98] sm:$0xff] }
  0x17   :  { %v762_v8 = vpack.c.bf16 %v94_v6, %v93_v5  ;;  %v77_v9 = vld [vmem:[%s1343_s1 + $0x100] sm:$0xff]  ;;  %v78_v10 = vld [vmem:[%s1343_s1 + $0x108] sm:$0xff]  ;;  %731 = vmatprep.subr.bf16.mxu0 %v730_v3  ;;  %v47_v14 = vld [vmem:[%s1343_s1 + $0x10] sm:$0xff]  ;;  %v734_v16 = vpack.c.bf16 %v64_v13, %v63_v11 }
  0x18   :  { %v764_v12 = vpack.c.bf16 %v78_v10, %v77_v9  ;;  %v48_v15 = vld [vmem:[%s1343_s1 + $0x18] sm:$0xff]  ;;  %733 = vmatpush3.bf16.msra.mxu0 %v732_v7  ;;  %v95_v18 = vld [vmem:[%s1343_s1 + $0x190] sm:$0xff]  ;;  %v65_v23 = vld [vmem:[%s1343_s1 + $0xa0] sm:$0xff] }
  0x19   :  { %763 = vmatprep.subr.bf16.mxu1 %v762_v8  ;;  %v736_v17 = vpack.c.bf16 %v48_v15, %v47_v14  ;;  %v96_v19 = vld [vmem:[%s1343_s1 + $0x198] sm:$0xff]  ;;  %v79_v20 = vld [vmem:[%s1343_s1 + $0x110] sm:$0xff]  ;;  %v66_v24 = vld [vmem:[%s1343_s1 + $0xa8] sm:$0xff]  ;;  %735 = vmatprep.subr.bf16.mxu0 %v734_v16 }
  0x1a   :  { %765 = vmatpush3.bf16.msra.mxu1 %v764_v12  ;;  %v766_v21 = vpack.c.bf16 %v96_v19, %v95_v18  ;;  %v80_v22 = vld [vmem:[%s1343_s1 + $0x118] sm:$0xff]  ;;  %v738_v26 = vpack.c.bf16 %v66_v24, %v65_v23  ;;  %v49_v27 = vld [vmem:[%s1343_s1 + $0x20] sm:$0xff]  ;;  %v50_v28 = vld [vmem:[%s1343_s1 + $0x28] sm:$0xff] }
  0x1b   :  { %v768_v25 = vpack.c.bf16 %v80_v22, %v79_v20  ;;  %v97_v29 = vld [vmem:[%s1343_s1 + $0x1a0] sm:$0xff]  ;;  %v98_v30 = vld [vmem:[%s1343_s1 + $0x1a8] sm:$0xff]  ;;  %v740_v33 = vpack.c.bf16 %v50_v28, %v49_v27  ;;  %v67_v35 = vld [vmem:[%s1343_s1 + $0xb0] sm:$0xff] }
  0x1c   :  { %767 = vmatprep.subr.bf16.mxu1 %v766_v21  ;;  %v81_v31 = vld [vmem:[%s1343_s1 + $0x120] sm:$0xff]  ;;  %v82_v32 = vld [vmem:[%s1343_s1 + $0x128] sm:$0xff]  ;;  %737 = vmatpush3.bf16.msra.mxu0 %v736_v17  ;;  %v770_v34 = vpack.c.bf16 %v98_v30, %v97_v29  ;;  %v68_v36 = vld [vmem:[%s1343_s1 + $0xb8] sm:$0xff] }
  0x1d   :  { %v51_v37 = vld [vmem:[%s1343_s1 + $0x30] sm:$0xff]  ;;  %739 = vmatprep.subr.bf16.mxu0 %v738_v26  ;;  %v772_v38 = vpack.c.bf16 %v82_v32, %v81_v31  ;;  %v742_v39 = vpack.c.bf16 %v68_v36, %v67_v35  ;;  %v52_v40 = vld [vmem:[%s1343_s1 + $0x38] sm:$0xff]  ;;  %v69_v46 = vld [vmem:[%s1343_s1 + $0xc0] sm:$0xff] }
  0x1e   :  { %769 = vmatpush3.bf16.msra.mxu1 %v768_v25  ;;  %v99_v41 = vld [vmem:[%s1343_s1 + $0x1b0] sm:$0xff]  ;;  %v100_v42 = vld [vmem:[%s1343_s1 + $0x1b8] sm:$0xff]  ;;  %v70_v47 = vld [vmem:[%s1343_s1 + $0xc8] sm:$0xff]  ;;  %v744_v48 = vpack.c.bf16 %v52_v40, %v51_v37 }
  0x1f   :  { %771 = vmatprep.subr.bf16.mxu1 %v770_v34  ;;  %v774_v43 = vpack.c.bf16 %v100_v42, %v99_v41  ;;  %v83_v44 = vld [vmem:[%s1343_s1 + $0x130] sm:$0xff]  ;;  %v84_v45 = vld [vmem:[%s1343_s1 + $0x138] sm:$0xff]  ;;  %v101_v49 = vld [vmem:[%s1343_s1 + $0x1c0] sm:$0xff]  ;;  %v746_v52 = vpack.c.bf16 %v70_v47, %v69_v46 }
  0x20   :  { %741 = vmatpush3.bf16.msra.mxu0 %v740_v33  ;;  %v102_v50 = vld [vmem:[%s1343_s1 + $0x1c8] sm:$0xff]  ;;  %v776_v51 = vpack.c.bf16 %v84_v45, %v83_v44  ;;  %v53_v53 = vld [vmem:[%s1343_s1 + $0x40] sm:$0xff]  ;;  %v71_v58 = vld [vmem:[%s1343_s1 + $0xd0] sm:$0xff] }
  0x21   :  { %743 = vmatprep.subr.bf16.mxu0 %v742_v39  ;;  %v54_v54 = vld [vmem:[%s1343_s1 + $0x48] sm:$0xff]  ;;  %v85_v55 = vld [vmem:[%s1343_s1 + $0x140] sm:$0xff]  ;;  %v778_v56 = vpack.c.bf16 %v102_v50, %v101_v49  ;;  %v72_v59 = vld [vmem:[%s1343_s1 + $0xd8] sm:$0xff]  ;;  %v936_v50 = vmov 0.0|0.0  }
  0x22   :  { %773 = vmatpush3.bf16.msra.mxu1 %v772_v38  ;;  %v86_v57 = vld [vmem:[%s1343_s1 + $0x148] sm:$0xff]  ;;  %v103_v60 = vld [vmem:[%s1343_s1 + $0x1d0] sm:$0xff]  ;;  %v104_v61 = vld [vmem:[%s1343_s1 + $0x1d8] sm:$0xff]  ;;  %v748_v62 = vpack.c.bf16 %v54_v54, %v53_v53  ;;  %v750_v0 = vpack.c.bf16 %v72_v59, %v71_v58 }
  0x23   :  { %775 = vmatprep.subr.bf16.mxu1 %v774_v43  ;;  %v780_v63 = vpack.c.bf16 %v86_v57, %v85_v55  ;;  %v55_v1 = vld [vmem:[%s1343_s1 + $0x50] sm:$0xff]  ;;  %v56_v2 = vld [vmem:[%s1343_s1 + $0x58] sm:$0xff]  ;;  %v782_v4 = vpack.c.bf16 %v104_v61, %v103_v60  ;;  %v73_v6 = vld [vmem:[%s1343_s1 + $0xe0] sm:$0xff]  ;;  %v938_v60 = vmov 0.0  }
  0x24   :  { %745 = vmatpush3.bf16.msra.mxu0 %v744_v48  ;;  %v87_v3 = vld [vmem:[%s1343_s1 + $0x150] sm:$0xff]  ;;  %v88_v5 = vld [vmem:[%s1343_s1 + $0x158] sm:$0xff]  ;;  %v74_v7 = vld [vmem:[%s1343_s1 + $0xe8] sm:$0xff]  ;;  %v752_v10 = vpack.c.bf16 %v56_v2, %v55_v1 }
  0x25   :  { %747 = vmatprep.subr.bf16.mxu0 %v746_v52  ;;  %v105_v8 = vld [vmem:[%s1343_s1 + $0x1e0] sm:$0xff]  ;;  %v106_v9 = vld [vmem:[%s1343_s1 + $0x1e8] sm:$0xff]  ;;  %v784_v13 = vpack.c.bf16 %v88_v5, %v87_v3  ;;  %v754_v14 = vpack.c.bf16 %v74_v7, %v73_v6  ;;  %v75_v19 = vld [vmem:[%s1343_s1 + $0xf0] sm:$0xff] }
  0x26   :  { %777 = vmatpush3.bf16.msra.mxu1 %v776_v51  ;;  %v57_v11 = vld [vmem:[%s1343_s1 + $0x60] sm:$0xff]  ;;  %v39_v12 = vld [vmem:[%s1342_s0 + $0x8] sm:$0xff]  ;;  %v786_v18 = vpack.c.bf16 %v106_v9, %v105_v8  ;;  %v76_v20 = vld [vmem:[%s1343_s1 + $0xf8] sm:$0xff] }
  0x27   :  { %779 = vmatprep.subr.bf16.mxu1 %v778_v56  ;;  %v58_v15 = vld [vmem:[%s1343_s1 + $0x68] sm:$0xff]  ;;  %v89_v16 = vld [vmem:[%s1343_s1 + $0x160] sm:$0xff]  ;;  %218 = vmatprep.mubr.f32.mxu0 %v39_v12  ;;  %v41_v21 = vld [vmem:[%s1342_s0 + $0x18] sm:$0xff]  ;;  %v758_v26 = vpack.c.bf16 %v76_v20, %v75_v19 }
  0x28   :  { %749 = vmatpush3.bf16.msra.mxu0 %v748_v62  ;;  %v90_v17 = vld [vmem:[%s1343_s1 + $0x168] sm:$0xff]  ;;  %v107_v22 = vld [vmem:[%s1343_s1 + $0x1f0] sm:$0xff]  ;;  %v108_v23 = vld [vmem:[%s1343_s1 + $0x1f8] sm:$0xff]  ;;  %288 = vmatprep.mubr.f32.mxu1 %v41_v21  ;;  %v756_v24 = vpack.c.bf16 %v58_v15, %v57_v11 }
  0x29   :  { %751 = vmatprep.subr.bf16.mxu0 %v750_v0  ;;  %v788_v25 = vpack.c.bf16 %v90_v17, %v89_v16  ;;  %v59_v27 = vld [vmem:[%s1343_s1 + $0x70] sm:$0xff]  ;;  %v60_v28 = vld [vmem:[%s1343_s1 + $0x78] sm:$0xff]  ;;  %v790_v30 = vpack.c.bf16 %v108_v23, %v107_v22  ;;  %v125_v32 = vld [vmem:[%s1343_s1 + $0x280] sm:$0xff] }
  0x2a   :  { %781 = vmatpush3.bf16.msra.mxu1 %v780_v63  ;;  %v91_v29 = vld [vmem:[%s1343_s1 + $0x170] sm:$0xff]  ;;  %v92_v31 = vld [vmem:[%s1343_s1 + $0x178] sm:$0xff]  ;;  %v126_v33 = vld [vmem:[%s1343_s1 + $0x288] sm:$0xff]  ;;  %v760_v34 = vpack.c.bf16 %v60_v28, %v59_v27 }
  0x2b   :  { %783 = vmatprep.subr.bf16.mxu1 %v782_v4  ;;  %v792_v35 = vpack.c.bf16 %v92_v31, %v91_v29  ;;  %v794_v36 = vpack.c.bf16 %v126_v33, %v125_v32  ;;  %v109_v37 = vld [vmem:[%s1343_s1 + $0x200] sm:$0xff]  ;;  %v110_v38 = vld [vmem:[%s1343_s1 + $0x208] sm:$0xff]  ;;  %v127_v39 = vld [vmem:[%s1343_s1 + $0x290] sm:$0xff] }
  0x2c   :  { %753 = vmatpush3.bf16.msra.mxu0 %v752_v10  ;;  %v128_v40 = vld [vmem:[%s1343_s1 + $0x298] sm:$0xff]  ;;  %v38_v41 = vld [vmem:[%s1342_s0] sm:$0xff]  ;;  %v796_v42 = vpack.c.bf16 %v110_v38, %v109_v37  ;;  %v40_v43 = vld [vmem:[%s1342_s0 + $0x10] sm:$0xff] }
  0x2d   :  { %755 = vmatprep.subr.bf16.mxu0 %v754_v14  ;;  %v111_v44 = vld [vmem:[%s1343_s1 + $0x210] sm:$0xff]  ;;  %v798_v45 = vpack.c.bf16 %v128_v40, %v127_v39  ;;  %v112_v46 = vld [vmem:[%s1343_s1 + $0x218] sm:$0xff]  ;;  %v129_v47 = vld [vmem:[%s1343_s1 + $0x2a0] sm:$0xff] }
  0x2e   :  { %785 = vmatpush3.bf16.msra.mxu1 %v784_v13  ;;  %v130_v48 = vld [vmem:[%s1343_s1 + $0x2a8] sm:$0xff]  ;;  %v141_v51 = vld [vmem:[%s1343_s1 + $0x300] sm:$0xff]  ;;  %v800_v54 = vpack.c.bf16 %v112_v46, %v111_v44  ;;  %v131_v58 = vld [vmem:[%s1343_s1 + $0x2b0] sm:$0xff] }
  0x2f   :  { %787 = vmatprep.subr.bf16.mxu1 %v786_v18  ;;  %v43_v49 = vld [vmem:[%s1342_s0 + $0x28] sm:$0xff]  ;;  %v802_v55 = vpack.c.bf16 %v130_v48, %v129_v47  ;;  %v113_v56 = vld [vmem:[%s1343_s1 + $0x220] sm:$0xff]  ;;  %v132_v59 = vld [vmem:[%s1343_s1 + $0x2b8] sm:$0xff] }
  0x30   :  { %757 = vmatpush3.bf16.msra.mxu0 %v756_v24  ;;  %v142_v52 = vld [vmem:[%s1343_s1 + $0x308] sm:$0xff]  ;;  %v44_v61 = vld [vmem:[%s1342_s0 + $0x30] sm:$0xff]  ;;  %v806_v63 = vpack.c.bf16 %v132_v59, %v131_v58  ;;  %v116_v1 = vld [vmem:[%s1343_s1 + $0x238] sm:$0xff] }
  0x31   :  { %759 = vmatprep.subr.bf16.mxu0 %v758_v26  ;;  %v827_v53 = vpack.c.bf16 %v142_v52, %v141_v51  ;;  %v114_v57 = vld [vmem:[%s1343_s1 + $0x228] sm:$0xff]  ;;  %v115_v0 = vld [vmem:[%s1343_s1 + $0x230] sm:$0xff]  ;;  %v133_v2 = vld [vmem:[%s1343_s1 + $0x2c0] sm:$0xff] }
  0x32   :  { %789 = vmatpush3.bf16.msra.mxu1 %v788_v25  ;;  %v804_v62 = vpack.c.bf16 %v114_v57, %v113_v56  ;;  %v134_v3 = vld [vmem:[%s1343_s1 + $0x2c8] sm:$0xff]  ;;  %v808_v4 = vpack.c.bf16 %v116_v1, %v115_v0  ;;  %v117_v6 = vld [vmem:[%s1343_s1 + $0x240] sm:$0xff]  ;;  %v135_v8 = vld [vmem:[%s1343_s1 + $0x2d0] sm:$0xff] }
  0x33   :  { %791 = vmatprep.subr.bf16.mxu1 %v790_v30  ;;  %v810_v5 = vpack.c.bf16 %v134_v3, %v133_v2  ;;  %v118_v7 = vld [vmem:[%s1343_s1 + $0x248] sm:$0xff]  ;;  %v136_v9 = vld [vmem:[%s1343_s1 + $0x2d8] sm:$0xff]  ;;  %v119_v12 = vld [vmem:[%s1343_s1 + $0x250] sm:$0xff] }
  0x34   :  { %761 = vmatpush3.bf16.msra.mxu0 %v760_v34  ;;  %v812_v10 = vpack.c.bf16 %v118_v7, %v117_v6  ;;  %v814_v11 = vpack.c.bf16 %v136_v9, %v135_v8  ;;  %v120_v13 = vld [vmem:[%s1343_s1 + $0x258] sm:$0xff]  ;;  %v137_v14 = vld [vmem:[%s1343_s1 + $0x2e0] sm:$0xff]  ;;  %v138_v15 = vld [vmem:[%s1343_s1 + $0x2e8] sm:$0xff] }
  0x35   :  { %795 = vmatprep.subr.bf16.mxu0 %v794_v36  ;;  %v816_v16 = vpack.c.bf16 %v120_v13, %v119_v12  ;;  %v818_v17 = vpack.c.bf16 %v138_v15, %v137_v14  ;;  %v121_v18 = vld [vmem:[%s1343_s1 + $0x260] sm:$0xff]  ;;  %v122_v19 = vld [vmem:[%s1343_s1 + $0x268] sm:$0xff]  ;;  %v139_v20 = vld [vmem:[%s1343_s1 + $0x2f0] sm:$0xff] }
  0x36   :  { %793 = vmatpush3.bf16.msra.mxu1 %v792_v35  ;;  %v140_v21 = vld [vmem:[%s1343_s1 + $0x2f8] sm:$0xff]  ;;  %v820_v22 = vpack.c.bf16 %v122_v19, %v121_v18  ;;  %v123_v24 = vld [vmem:[%s1343_s1 + $0x270] sm:$0xff]  ;;  %v42_v27 = vld [vmem:[%s1342_s0 + $0x20] sm:$0xff] }
  0x37   :  { %826 = vmatprep.subr.bf16.mxu1 %v936_v50  ;;  %219 = vmatmul.mubr.f32.vlgmr.msra.gmra.mrb[0].mxu0 %v38_v41  ;;  %v822_v23 = vpack.c.bf16 %v140_v21, %v139_v20  ;;  %v124_v25 = vld [vmem:[%s1343_s1 + $0x278] sm:$0xff]  ;;  %v437_v28 = vld [vmem:[#allocation2] sm:$0xff]  ;;  %v439_v30 = vld [vmem:[#allocation2 + $0x10] sm:$0xff] }
  0x38   :  { %797 = vmatpush3.bf16.msra.mxu0 %v796_v42  ;;  %358 = vmatprep.mubr.f32.mxu0 %v43_v49  ;;  %v824_v26 = vpack.c.bf16 %v124_v25, %v123_v24  ;;  %v438_v29 = vld [vmem:[#allocation2 + $0x8] sm:$0xff]  ;;  %v440_v32 = vld [vmem:[#allocation2 + $0x18] sm:$0xff]  ;;  %v441_v34 = vld [vmem:[#allocation2 + $0x20] sm:$0xff] }
  0x39   :  { %289 = vmatmul.mubr.f32.vlgmr.msra.gmra.mrb[0].mxu1 %v40_v43  ;;  %799 = vmatprep.subr.bf16.mxu0 %v798_v45  ;;  %v830_v31 = vpack.c.bf16 %v438_v29, %v437_v28  ;;  %v833_v33 = vpack.c.bf16 %v440_v32, %v439_v30  ;;  %v442_v35 = vld [vmem:[#allocation2 + $0x28] sm:$0xff]  ;;  %v443_v37 = vld [vmem:[#allocation2 + $0x30] sm:$0xff]  ;;  %v444_v38 = vld [vmem:[#allocation2 + $0x38] sm:$0xff] }
  0x3a   :  { %828 = vmatpush3.bf16.msra.mxu1 %v827_v53  ;;  %692 = vmatprep.mubr.msk.f32.mxu1 %vm937_vm0, %v938_v60  ;;  %v836_v36 = vpack.c.bf16 %v442_v35, %v441_v34  ;;  %v839_v39 = vpack.c.bf16 %v444_v38, %v443_v37  ;;  %v445_v40 = vld [vmem:[#allocation2 + $0x40] sm:$0xff]  ;;  %v446_v41 = vld [vmem:[#allocation2 + $0x48] sm:$0xff]  ;;  %v447_v43 = vld [vmem:[#allocation2 + $0x50] sm:$0xff] }
  0x3b   :  { %829 = vmatprep.subr.bf16.mxu1 %v936_v50  ;;  %v842_v42 = vpack.c.bf16 %v446_v41, %v445_v40  ;;  %v448_v44 = vld [vmem:[#allocation2 + $0x58] sm:$0xff]  ;;  %v449_v46 = vld [vmem:[#allocation2 + $0x60] sm:$0xff]  ;;  %v450_v47 = vld [vmem:[#allocation2 + $0x68] sm:$0xff] }
  0x3c   :  { %801 = vmatpush3.bf16.msra.mxu0 %v800_v54  ;;  %v845_v45 = vpack.c.bf16 %v448_v44, %v447_v43  ;;  %v848_v48 = vpack.c.bf16 %v450_v47, %v449_v46  ;;  %v451_v49 = vld [vmem:[#allocation2 + $0x70] sm:$0xff]  ;;  %v452_v51 = vld [vmem:[#allocation2 + $0x78] sm:$0xff] }
  0x3d   :  { %803 = vmatprep.subr.bf16.mxu0 %v802_v55  ;;  %693 = vmatmul.mubr.msk.f32.vlgmr.msra.gmra.mrb[2].mxu1 %vm150_vm1, %v44_v61  ;;  %v851_v52 = vpack.c.bf16 %v452_v51, %v451_v49  ;;  %v560_v54 = vld [vmem:[%s1344_s2] ss:$0 sm:$0xff]  ;;  %s537_s2 = sshll.u32 %s939_s20, 4  ;;  %s538_s2 = int_to_ptr.vmem [resolvable:$true] %s537_s2 }
  0x3e   :  { %727 = vmatprep.mubr.msk.f32.mxu1 %vm937_vm0, %v938_v60  ;;  %831 = vmatpush3.bf16.msra.mxu1 %v830_v31  ;;  %s883_s21 = scalar_lea.vmem %s538_s2, 128  ;;  %p888_p9 = scmp.lt.s32.totalorder %s538_s2, %s538_s2 }
  0x3f   :  { %832 = vmatprep.subr.bf16.mxu1 %v936_v50  ;;  %p884_p8 = scmp.ne.s32.totalorder %s538_s2, %s883_s21  ;;  %p889_p10 = scmp.lt.s32.totalorder %s883_s21, %s883_s21 }
  0x40   :  { %805 = vmatpush3.bf16.msra.mxu0 %v804_v62 }
  0x41   :  { %807 = vmatprep.subr.bf16.mxu0 %v806_v63  ;;  %p890_p11 = por %p889_p10, %p888_p9 }
  0x42   :  { %834 = vmatpush3.bf16.msra.mxu1 %v833_v33 }
  0x43   :  { %835 = vmatprep.subr.bf16.mxu1 %v936_v50  ;;  %p891_p12 = pnand %p890_p11, %p884_p8 }
  0x44   :  { %809 = vmatpush3.bf16.msra.mxu0 %v808_v4 }
  0x45   :  { %811 = vmatprep.subr.bf16.mxu0 %v810_v5 }
  0x46   :  { %837 = vmatpush3.bf16.msra.mxu1 %v836_v36 }
  0x47   :  { %838 = vmatprep.subr.bf16.mxu1 %v936_v50 }
  0x48   :  { %813 = vmatpush3.bf16.msra.mxu0 %v812_v10 }
  0x49   :  { %815 = vmatprep.subr.bf16.mxu0 %v814_v11 }
  0x4a   :  { %840 = vmatpush3.bf16.msra.mxu1 %v839_v39 }
  0x4b   :  { %841 = vmatprep.subr.bf16.mxu1 %v936_v50 }
  0x4c   :  { %817 = vmatpush3.bf16.msra.mxu0 %v816_v16 }
  0x4d   :  { %819 = vmatprep.subr.bf16.mxu0 %v818_v17 }
  0x4e   :  { %843 = vmatpush3.bf16.msra.mxu1 %v842_v42 }
  0x4f   :  { %844 = vmatprep.subr.bf16.mxu1 %v936_v50 }
  0x50   :  { %821 = vmatpush3.bf16.msra.mxu0 %v820_v22 }
  0x51   :  { %823 = vmatprep.subr.bf16.mxu0 %v822_v23 }
  0x52   :  { %846 = vmatpush3.bf16.msra.mxu1 %v845_v45 }
  0x53   :  { %847 = vmatprep.subr.bf16.mxu1 %v936_v50 }
  0x54   :  { %825 = vmatpush3.bf16.msra.mxu0 %v824_v26 }
  0x56   :  { %849 = vmatpush3.bf16.msra.mxu1 %v848_v48 }
  0x57   :  { %359 = vmatmul.mubr.f32.vlgmr.msra.gmra.mrb[2].mxu0 %v42_v27  ;;  %850 = vmatprep.subr.bf16.mxu1 %v936_v50 }
  0x5a   :  { %852 = vmatpush3.bf16.msra.mxu1 %v851_v52 }
 0x10a   :  { %v595_v53 = vpop.f32.mrb[0].mxu0 }
 0x10b   :  { %v596_v55 = vpop.f32.mrb[1].mxu0 }
 0x10c   :  { %v630_v56 = vpop.f32.mrb[0].mxu1  ;;  %v597_v57 = vadd.f32 %v596_v55, %v595_v53 }
 0x10d   :  { %v631_v58 = vpop.f32.mrb[1].mxu1 }
 0x10e   :  { %v632_v59 = vadd.f32 %v631_v58, %v630_v56  ;;  %v221_v60 = vadd.f32 %v597_v57, %v560_v54 }
 0x110   :  { %v291_v61 = vadd.f32 %v632_v59, %v221_v60  ;;  %v430_v62 = vpop.f32.mrb[2].mxu1 }
 0x111   :  { %v694_v63 = vpop.f32.mrb[3].mxu1 }
 0x12a   :  { %v665_v0 = vpop.f32.mrb[2].mxu0 }
 0x12b   :  { %v666_v50 = vpop.f32.mrb[3].mxu0 }
 0x12c   :  { %v667_v1 = vadd.f32 %v666_v50, %v665_v0 }
 0x12e   :  { %v361_v2 = vadd.f32 %v667_v1, %v291_v61 }
 0x130   :  { %v431_v3 = vadd.f32 %v430_v62, %v361_v2 }
 0x132   :  { %v434_v4 = vmul.f32 0.01, %v431_v3 }
 0x134   :  { %v435_v5 = vmax.f32 %v431_v3, %v434_v4 }
 0x136   :  { %436 = vst [vmem:[#allocation5] sm:$0xff] %v435_v5  ;;  %728 = vmatmul.mubr.f32.vlgmr.msra.gmra.mrb[4].mxu1 %v435_v5 }
 0x137   :  { %894 = shalt.err (!%p891_p12)
}
 0x138   :  { %s895_s24 = scalar_lea.hbm %s1347_s5, 128 }
 0x139   :  { %p896_p13 = scmp.ne.s32.totalorder %s1347_s5, %s895_s24  ;;  %p899_p0 = scmp.lt.u32.totalorder %s895_s24, %s1347_s5 }
 0x13b   :  { %p901_p1 = pnand %p899_p0, %p896_p13 }
 0x13d   :  { %904 = shalt.err (!%p901_p1)
}
 0x13e   :  { %540 = dma.vmem_to_hbm [thread:$0]  %s538_s2, 128, %s1347_s5, [#allocation4]   ;;  %v562_v6 = vld [vmem:[%s1346_s4] ss:$0 sm:$0xff] }
 0x13f   :  { %s940_s9 = smov [#allocation6]  }
 0x140   :  { %s547_s10 = sshll.u32 %s940_s9, 4  ;;  %s548_s10 = int_to_ptr.vmem [resolvable:$true] %s547_s10 }
 0x141   :  { %s905_s11 = scalar_lea.vmem %s548_s10, 128  ;;  %p910_p3 = scmp.lt.s32.totalorder %s548_s10, %s548_s10 }
 0x142   :  { %p906_p2 = scmp.ne.s32.totalorder %s548_s10, %s905_s11  ;;  %p911_p4 = scmp.lt.s32.totalorder %s905_s11, %s905_s11 }
 0x144   :  { %p912_p5 = por %p911_p4, %p910_p3 }
 0x146   :  { %p913_p6 = pnand %p912_p5, %p906_p2 }
 0x209   :  { %v526_v7 = vpop.f32.mrb[4].mxu1 }
 0x20a   :  { %v527_v8 = vadd.f32 %v562_v6, %v526_v7  ;;  %v729_v9 = vpop.f32.mrb[5].mxu1 }
 0x20c   :  { %530 = vst [vmem:[#allocation6] sm:$0xff] %v527_v8 }
 0x20d   :  { %916 = shalt.err (!%p913_p6)
}
 0x20e   :  { %s917_s13 = scalar_lea.hbm %s1348_s6, 128 }
 0x20f   :  { %p918_p7 = scmp.ne.s32.totalorder %s1348_s6, %s917_s13  ;;  %p921_p8 = scmp.lt.u32.totalorder %s917_s13, %s1348_s6 }
 0x211   :  { %p923_p9 = pnand %p921_p8, %p918_p7 }
 0x213   :  { %926 = shalt.err (!%p923_p9)
}
 0x214   :  { %550 = dma.vmem_to_hbm [thread:$0]  %s548_s10, 128, %s1348_s6, [#allocation7]  }
 0x215   :  { %929 = dma.done.wait [#allocation4], 128  }
 0x216   :  { %930 = vsyncadd [#allocation4], 4294967168 }
 0x217   :  { %931 = dma.done.wait [#allocation7], 128  }
 0x218   :  { %932 = vsyncadd [#allocation7], 4294967168 }
 0x219   :  { %557 = vsyncpa [#allocation3], 1 }
 0x21a   :  { %558 = vsyncpa [#allocation4], 1 }
 0x21b   :  { %559 = vsyncpa [#allocation7], 1 }

</bundles_post_ra>
